<compile_context>
chip_gen: v6e
topology: v6e:2x2x1
jax: 0.10.0
libtpu: 0.0.40
codegen_flags: <defaults>
</compile_context>

<pallas_src>
import jax
import jax.numpy as jnp
from jax.experimental import pallas as pl
from jax.experimental.pallas import tpu as pltpu


def expert_kernel(x_ref, w1_ref, b1_ref, w2_ref, b2_ref, o_ref):
    # x_ref : (TB, D)  f32    activation tile (pipelined over batch)
    # w1_ref: (D, H)   bf16   first Linear weight, grid-resident
    # b1_ref: (1, H)   f32
    # w2_ref: (1, H)   f32    second Linear weight as a lane-dense row
    # b2_ref: (1,)     f32    SMEM scalar
    # o_ref : (1, TB)  f32    lane-dense output tile
    #
    # In-kernel f32 -> bf16 cast (VPU work hidden under the MXU); keeps the
    # HBM x stream at 4 B/elem with no wrapper-side copy.
    x_bf = x_ref[...].astype(jnp.bfloat16)
    # Linear 1 on the MXU (bf16 operands, f32 accumulation) + bias + ReLU.
    h = jnp.dot(x_bf, w1_ref[...], preferred_element_type=jnp.float32)
    h = jnp.maximum(h + b1_ref[...], 0.0)                       # (TB, H) f32
    # Linear 2 (H -> 1) as VPU multiply + XLU lane reduce.
    y = jnp.sum(h * w2_ref[...], axis=-1) + b2_ref[0]           # (TB,) f32
    o_ref[...] = y.reshape(1, -1).astype(o_ref.dtype)           # lane-dense store


def _choose_tb(B, D):
    """Batch tile: target ~1 MiB per pipelined f32 x buffer, multiple of 128
    for an unmasked lane-dense output store; a single full-batch block when B
    is small (no padding, no redundant work)."""
    target = (1 << 20) // max(D * 4, 1)
    target = max(256, min(8192, target))
    target = max(128, (target // 128) * 128)
    if B <= target:
        return B
    return target


def expert_forward(x, w1, b1, w2, b2):
    """Forward pass of Expert.

    x : (batch, *dims)  -- flattened like nn.Flatten.
    w1: (input_dim, hidden_dim)   (transposed vs. torch's (out, in))
    b1: (hidden_dim,)
    w2: (hidden_dim,)             (torch weight (1, hidden) row)
    b2: (1,)

    Dtype policy (explicit): x and w1 are used as bfloat16 MXU operands (x is
    cast inside the kernel); accumulation, biases, ReLU and the second layer
    stay float32.
    """
    B = x.shape[0]
    x_flat = x.reshape(B, -1).astype(jnp.float32)
    D = x_flat.shape[1]
    H = w1.shape[1]

    w1_bf = w1.astype(jnp.bfloat16)
    b1_r = b1.reshape(1, H).astype(jnp.float32)
    w2_r = w2.reshape(1, H).astype(jnp.float32)
    b2_r = b2.reshape(1).astype(jnp.float32)

    TB = _choose_tb(B, D)
    grid_b = pl.cdiv(B, TB)

    # VMEM budget from the actual footprint; clamp to 48 MiB (safe on v7x's
    # 64 MiB physical VMEM, well within v5e/v6e's 128 MiB).
    bytes_x = 2 * TB * D * 4            # double-buffered f32 x tile
    bytes_w1 = D * H * 2                # resident bf16 weight
    bytes_h = 2 * TB * H * 4            # f32 h temp + bf16 x copy headroom
    bytes_misc = 2 * (2 * H * 4) + 2 * TB * 4
    footprint = bytes_x + bytes_w1 + bytes_h + bytes_misc
    vmem_limit = min(max(int(footprint * 1.5) + (4 << 20), 32 << 20), 48 << 20)

    cost = pl.CostEstimate(
        flops=2 * B * D * H + 2 * B * H,
        transcendentals=0,
        bytes_accessed=(B * D * 4) + (D * H * 2) + (2 * H + 1) * 4 + B * 4,
    )

    out = pl.pallas_call(
        expert_kernel,
        out_shape=jax.ShapeDtypeStruct((1, B), jnp.float32),
        grid=(grid_b,),
        in_specs=[
            pl.BlockSpec((TB, D), lambda i: (i, 0)),   # x: tiled + pipelined
            pl.BlockSpec((D, H), lambda i: (0, 0)),    # w1: resident
            pl.BlockSpec((1, H), lambda i: (0, 0)),    # b1: resident
            pl.BlockSpec((1, H), lambda i: (0, 0)),    # w2: resident
            pl.BlockSpec(memory_space=pltpu.MemorySpace.SMEM),   # b2 scalar
        ],
        out_specs=pl.BlockSpec((1, TB), lambda i: (0, i)),       # lane-dense
        compiler_params=pltpu.CompilerParams(
            # "parallel" shards the batch axis across v7x's 2 TensorCores;
            # no-op on v5e/v6e.
            dimension_semantics=("parallel",),
            vmem_limit_bytes=vmem_limit,
        ),
        cost_estimate=cost,
    )(x_flat, w1_bf, b1_r, w2_r, b2_r)

    return out[0, :].reshape(B, 1)


def init_expert_params(key, input_dim, hidden_dim):
    """Deterministic init matching torch.nn.Linear default (uniform +/- 1/sqrt(fan_in)).

    Stored in kernel-friendly layout: w1 is (D, H) (torch weight transposed),
    w2 is the (H,) row of torch's (1, H) second-layer weight.
    """
    k1, k2, k3, k4 = jax.random.split(key, 4)
    bound1 = 1.0 / jnp.sqrt(input_dim)
    bound2 = 1.0 / jnp.sqrt(hidden_dim)
    w1 = jax.random.uniform(k1, (input_dim, hidden_dim), jnp.float32, -bound1, bound1)
    b1 = jax.random.uniform(k2, (hidden_dim,), jnp.float32, -bound1, bound1)
    w2 = jax.random.uniform(k3, (hidden_dim,), jnp.float32, -bound2, bound2)
    b2 = jax.random.uniform(k4, (1,), jnp.float32, -bound2, bound2)
    return w1, b1, w2, b2


if __name__ == "__main__":
    key = jax.random.PRNGKey(0)
    kx, kp = jax.random.split(key)

    # Small synthetic time-series-like input: (batch=8, seq=8, features=4)
    # -> Flatten gives input_dim = 32; hidden_dim = 32.
    batch, seq, feat = 8, 8, 4
    input_dim = seq * feat
    hidden_dim = 32

    x = jax.random.normal(kx, (batch, seq, feat), jnp.float32)
    w1, b1, w2, b2 = init_expert_params(kp, input_dim, hidden_dim)

    out = expert_forward(x, w1, b1, w2, b2)
    jax.block_until_ready(out)

    # Pure-JAX reference with the same bf16 operand quantization, f32 math.
    x_flat = x.reshape(batch, -1)
    xq = x_flat.astype(jnp.bfloat16).astype(jnp.float32)
    w1q = w1.astype(jnp.bfloat16).astype(jnp.float32)
    h_ref = jnp.maximum(xq @ w1q + b1.reshape(1, -1), 0.0)
    ref = (h_ref * w2.reshape(1, -1)).sum(-1, keepdims=True) + b2.reshape(1, 1)

    assert out.shape == (batch, 1)
    assert jnp.allclose(out, ref, atol=1e-3, rtol=1e-3)

    print("KERNEL_OK")
</pallas_src>

<mosaic_0001>
module attributes {stable_mosaic.version = 11 : i64} {
  func.func @expert_kernel(%arg0: i32, %arg1: memref<8x32xf32, #tpu.memory_space<vmem>>, %arg2: memref<32x32xbf16, #tpu.memory_space<vmem>>, %arg3: memref<1x32xf32, #tpu.memory_space<vmem>>, %arg4: memref<1x32xf32, #tpu.memory_space<vmem>>, %arg5: memref<1xf32, #tpu.memory_space<smem>>, %arg6: memref<1x8xf32, #tpu.memory_space<vmem>>) attributes {dimension_semantics = [#tpu.dimension_semantics<parallel>], iteration_bounds = array<i64: 1>, scalar_prefetch = 0 : i64, scratch_operands = 0 : i64, tpu.core_type = #tpu.core_type<tc>, window_params = [{transform_indices = @transform_0, window_bounds = array<i64: 8, 32>}, {pipeline_mode = #tpu.pipeline_mode<synchronous>, transform_indices = @transform_1, window_bounds = array<i64: 32, 32>}, {pipeline_mode = #tpu.pipeline_mode<synchronous>, transform_indices = @transform_2, window_bounds = array<i64: 1, 32>}, {pipeline_mode = #tpu.pipeline_mode<synchronous>, transform_indices = @transform_3, window_bounds = array<i64: 1, 32>}, {transform_indices = @transform_4, window_bounds = array<i64: 1>}, {transform_indices = @transform_5, window_bounds = array<i64: 1, 8>}]} {
    %c0 = arith.constant 0 : index
    %c0_0 = arith.constant 0 : index
    %0 = vector.load %arg1[%c0, %c0_0] : memref<8x32xf32, #tpu.memory_space<vmem>>, vector<8x32xf32>
    %1 = arith.truncf %0 : vector<8x32xf32> to vector<8x32xbf16>
    %c0_1 = arith.constant 0 : index
    %c0_2 = arith.constant 0 : index
    %2 = vector.load %arg2[%c0_1, %c0_2] : memref<32x32xbf16, #tpu.memory_space<vmem>>, vector<32x32xbf16>
    %cst = arith.constant dense<0.000000e+00> : vector<8x32xf32>
    %3 = tpu.matmul %1, %2, %cst {dimension_numbers = #tpu.dot_dimension_numbers<[1], [0], [0], [1], [0, 0, 1, 1], [], []>} : vector<8x32xbf16>, vector<32x32xbf16>, vector<8x32xf32> -> vector<8x32xf32>
    %c0_3 = arith.constant 0 : index
    %c0_4 = arith.constant 0 : index
    %4 = vector.load %arg3[%c0_3, %c0_4] : memref<1x32xf32, #tpu.memory_space<vmem>>, vector<1x32xf32>
    %5 = vector.broadcast %4 : vector<1x32xf32> to vector<8x32xf32>
    %6 = arith.addf %3, %5 : vector<8x32xf32>
    %cst_5 = arith.constant 0.000000e+00 : f32
    %7 = vector.broadcast %cst_5 : f32 to vector<8x32xf32>
    %8 = arith.maximumf %6, %7 : vector<8x32xf32>
    %c0_6 = arith.constant 0 : index
    %c0_7 = arith.constant 0 : index
    %9 = vector.load %arg4[%c0_6, %c0_7] : memref<1x32xf32, #tpu.memory_space<vmem>>, vector<1x32xf32>
    %10 = vector.broadcast %9 : vector<1x32xf32> to vector<8x32xf32>
    %11 = arith.mulf %8, %10 : vector<8x32xf32>
    %cst_8 = arith.constant dense<0.000000e+00> : vector<8xf32>
    %12 = vector.multi_reduction <add>, %11, %cst_8 [1] : vector<8x32xf32> to vector<8xf32>
    %c0_9 = arith.constant 0 : index
    %13 = memref.load %arg5[%c0_9] : memref<1xf32, #tpu.memory_space<smem>>
    %14 = vector.broadcast %13 : f32 to vector<8xf32>
    %15 = arith.addf %12, %14 : vector<8xf32>
    %16 = vector.shape_cast %15 : vector<8xf32> to vector<1x8xf32>
    %c0_10 = arith.constant 0 : index
    %c0_11 = arith.constant 0 : index
    %17 = vector.load %arg6[%c0_10, %c0_11] : memref<1x8xf32, #tpu.memory_space<vmem>>, vector<1x8xf32>
    tpu.vector_store %arg6[%c0_10, %c0_11], %16 {strides = array<i32>} : memref<1x8xf32, #tpu.memory_space<vmem>>, vector<1x8xf32>,
    return
  }
  func.func @transform_0(%arg0: i32) -> (i32, i32) {
    %c0_i32 = arith.constant 0 : i32
    %c0_i32_0 = arith.constant 0 : i32
    return %arg0, %c0_i32 : i32, i32
  }
  func.func @transform_1(%arg0: i32) -> (i32, i32) {
    %c0_i32 = arith.constant 0 : i32
    %c0_i32_0 = arith.constant 0 : i32
    %c0_i32_1 = arith.constant 0 : i32
    return %c0_i32, %c0_i32_0 : i32, i32
  }
  func.func @transform_2(%arg0: i32) -> (i32, i32) {
    %c0_i32 = arith.constant 0 : i32
    %c0_i32_0 = arith.constant 0 : i32
    %c0_i32_1 = arith.constant 0 : i32
    return %c0_i32, %c0_i32_0 : i32, i32
  }
  func.func @transform_3(%arg0: i32) -> (i32, i32) {
    %c0_i32 = arith.constant 0 : i32
    %c0_i32_0 = arith.constant 0 : i32
    %c0_i32_1 = arith.constant 0 : i32
    return %c0_i32, %c0_i32_0 : i32, i32
  }
  func.func @transform_4(%arg0: i32) -> i32 {
    %c0_i32 = arith.constant 0 : i32
    %c0_i32_0 = arith.constant 0 : i32
    return %c0_i32 : i32
  }
  func.func @transform_5(%arg0: i32) -> (i32, i32) {
    %c0_i32 = arith.constant 0 : i32
    %c0_i32_0 = arith.constant 0 : i32
    return %c0_i32, %arg0 : i32, i32
  }
}

</mosaic_0001>

<bundles_post_ra>
// kernel: tpu_custom_call.1
= control target key start
LH: loop header
LB: loop body
LE: loop exit
PB: predicated region body
PF: predicated region fallthrough
CT: control target
= control target key end

     0   :  { %11 = vsyncpa [#allocation4], 0  ;;  %s305_s0 = inlined_call_operand.hbm [shape: f32[8,32], index: 0, kind: input, shape index: {}]   ;;  %s306_s1 = inlined_call_operand.hbm [shape: bf16[32,32], index: 1, kind: input, shape index: {}]   ;;  %s307_s2 = inlined_call_operand.vmem [shape: f32[1,32], index: 2, kind: input, shape index: {}]   ;;  %s308_s3 = inlined_call_operand.vmem [shape: f32[1,32], index: 3, kind: input, shape index: {}]   ;;  %s309_s4 = inlined_call_operand.<no memory space> [shape: f32[1], index: 4, kind: input, shape index: {}]   ;;  %s310_s5 = inlined_call_operand.hbm [shape: f32[1,8], index: 5, kind: output, shape index: {}]  }
   0x1   :  { %12 = vsyncpa [#allocation7], 0 }
   0x2   :  { %13 = vsyncpa [#allocation5], 0  ;;  %s250_s18 = smov [#allocation3]   ;;  %s251_s20 = smov [#allocation6]  }
   0x3   :  { %s20_s19 = sshll.u32 %s250_s18, 4  ;;  %s29_s21 = sshll.u32 %s251_s20, 4  ;;  %s21_s19 = int_to_ptr.vmem [resolvable:$true] %s20_s19  ;;  %s30_s21 = int_to_ptr.vmem [resolvable:$true] %s29_s21 }
   0x4   :  { %s192_s22 = scalar_lea.vmem %s21_s19, 128  ;;  %p197_p1 = scmp.lt.s32.totalorder %s21_s19, %s21_s19 }
   0x5   :  { %p193_p0 = scmp.ne.s32.totalorder %s21_s19, %s192_s22  ;;  %p198_p2 = scmp.lt.s32.totalorder %s192_s22, %s192_s22 }
   0x7   :  { %p199_p3 = por %p198_p2, %p197_p1 }
   0x9   :  { %p200_p4 = pnand %p199_p3, %p193_p0 }
   0xb   :  { %203 = shalt.err (!%p200_p4)
}
   0xc   :  { %23 = dma.hbm_to_vmem [thread:$0]  %s305_s0, 128, %s21_s19, [#allocation4]  }
   0xd   :  { %s212_s25 = scalar_lea.vmem %s30_s21, 256  ;;  %p217_p6 = scmp.lt.s32.totalorder %s30_s21, %s30_s21 }
   0xe   :  { %p213_p5 = scmp.ne.s32.totalorder %s30_s21, %s212_s25  ;;  %p218_p7 = scmp.lt.s32.totalorder %s212_s25, %s212_s25 }
  0x10   :  { %p219_p8 = por %p218_p7, %p217_p6 }
  0x12   :  { %p220_p9 = pnand %p219_p8, %p213_p5 }
  0x14   :  { %223 = shalt.err (!%p220_p9)
}
  0x15   :  { %s252_s26 = smov 64   ;;  %s253_s27 = smov 4  }
  0x16   :  { %35 = dma.hbm_to_vmem [thread:$0]  %s306_s1, 256, %s30_s21, [#allocation7], %s252_s26, %s252_s26, %s253_s27  }
  0x17   :  { %244 = dma.done.wait [#allocation4], 128  }
  0x18   :  { %245 = vsyncadd [#allocation4], 4294967168 }
  0x19   :  { %246 = dma.done.wait [#allocation7], 256  }
  0x1a   :  { %247 = vsyncadd [#allocation7], 4294967040  ;;  %v254_v0 = vmov 0.0   ;;  %vm255_vm0 = vmmov 0   ;;  %v182_v1 = vld [vmem:[#allocation6 + $0x8] sm:$0xff]   ;;  %v183_v2 = vld [vmem:[#allocation6] sm:$0xff]   ;;  %v134_v15 = vlaneseq  ;;  %v131_v18 = vstv %s309_s4 }
  0x1b   :  { %167 = vmatprep.subr.bf16.mxu0 %v254_v0  ;;  %171 = vmatprep.mubr.msk.bf16.mxu0 %vm255_vm0, %v254_v0  ;;  %v49_v3 = vld [vmem:[#allocation3] sm:$0xff]  ;;  %vm74_vm1 = vcmask 261120   ;;  %vm141_vm2 = vcmask 57344  }
  0x1c   :  { %168 = vmatpush3.bf16.msra.mxu0 %v182_v1  ;;  %v50_v4 = vpack.c.bf16 %v49_v3, %v49_v3  ;;  %v159_v5 = vld [vmem:[%s307_s2] ss:$0 sm:$0xff]  ;;  %v135_v16 = vand.u32 127, %v134_v15  ;;  %v137_v17 = vshrl.u32 %v134_v15, 7  ;;  %s256_s2 = smov [#allocation8]  }
  0x1d   :  { %169 = vmatprep.subr.bf16.mxu0 %v254_v0  ;;  %v163_v9 = vld [vmem:[%s308_s3] ss:$0 sm:$0xff]  ;;  %s149_s9 = sshll.u32 %s256_s2, 4  ;;  %s150_s9 = int_to_ptr.vmem [resolvable:$true] %s149_s9 }
  0x1e   :  { %v138_v19 = vsub.s32 %v135_v16, %v137_v17  ;;  %s224_s3 = scalar_lea.vmem %s150_s9, 16  ;;  %s228_s10 = scalar_lea.vmem %s150_s9, 32 }
  0x1f   :  { %p225_p10 = scmp.ne.s32.totalorder %s150_s9, %s224_s3  ;;  %p229_p11 = scmp.lt.s32.totalorder %s150_s9, %s150_s9 }
  0x20   :  { %170 = vmatpush3.bf16.msra.mxu0 %v183_v2  ;;  %p230_p12 = scmp.lt.s32.totalorder %s228_s10, %s224_s3 }
  0x22   :  { %p231_p13 = por %p230_p12, %p229_p11 }
  0x23   :  { %172 = vmatmul.mubr.msk.bf16.vlgmr.msra.gmra.mxu0 %vm74_vm1, %v50_v4 }
  0x24   :  { %p232_p0 = pnand %p231_p13, %p225_p10 }
  0xe3   :  { %v112_v6 = vpop.f32.mrf.mxu0 }
  0xe4   :  { %v113_v7 = vadd.f32 %v159_v5, %v112_v6 }
  0xe5   :  { %v173_v8 = vpop.f32.mrf.mxu0 }
  0xe6   :  { %v118_v10 = vmax.f32 %v113_v7, 0.0 }
  0xe7   :  { %v115_v11 = vpop.f32.mrf.mxu0 }
  0xe8   :  { %v126_v12 = vmul.f32 %v163_v9, %v118_v10 }
  0xe9   :  { %v174_v13 = vpop.f32.mrf.mxu0 }
  0xea   :  { %v127_v14 = vsel %vm74_vm1, %v126_v12, 0.0 }
  0xeb   :  { %128 = vadd.xlane.f32.xlu0 %v127_v14 }
 0x174   :  { %v129_v20 = vpop.xlane.xlu0 %128 }
 0x175   :  { %v132_v21 = vadd.f32 %v131_v18, %v129_v20 }
 0x177   :  { %v139_v22 = vrot.slane %v132_v21, %v138_v19 }
 0x179   :  { %142 = vst.msk [vmem:[#allocation8] sm:$0x1] %vm141_vm2, %v139_v22 }
 0x17a   :  { %235 = shalt.err (!%p232_p0)
}
 0x17b   :  { %152 = dma.vmem_to_hbm [thread:$0]  %s150_s9, 16, %s310_s5, [#allocation5]  }
 0x17c   :  { %248 = dma.done.wait [#allocation5], 16  }
 0x17d   :  { %249 = vsyncadd [#allocation5], 4294967280 }
 0x17e   :  { %156 = vsyncpa [#allocation4], 1 }
 0x17f   :  { %157 = vsyncpa [#allocation7], 1 }
 0x180   :  { %158 = vsyncpa [#allocation5], 1 }

</bundles_post_ra>
